<compile_context>
chip_gen: v7x
topology: tpu7x:2x2x1
jax: 0.10.0
libtpu: 0.0.40
codegen_flags: <defaults>
</compile_context>

<pallas_src>
import functools

import jax
import jax.numpy as jnp
from jax import lax
from jax.experimental import pallas as pl
from jax.experimental.pallas import tpu as pltpu

EPS = 1e-5


def _vmem_limit_bytes():
    """Generation-aware scoped-VMEM limit: ~75% of physical VMEM."""
    cap = 64 * 1024 * 1024
    try:
        info = pltpu.get_tpu_info()
        c = getattr(info, "vmem_capacity_bytes", None)
        if c:
            cap = int(c)
    except Exception:
        pass
    return int(cap * 3 // 4)


def _layer_norm_f32(x, w, b):
    mu = jnp.mean(x, axis=-1, keepdims=True)
    var = jnp.mean((x - mu) ** 2, axis=-1, keepdims=True)
    return (x - mu) * lax.rsqrt(var + EPS) * w + b


def _encoder_stack_kernel(x_ref,
                          wqkv_ref, bqkv_ref,
                          wo_ref,
                          w1_ref, b1_ref,
                          w2_ref,
                          vec_ref,
                          out_ref,
                          x_scratch,
                          *, num_heads):
    """One grid step = one encoder layer applied to one batch tile.

    Grid = (batch_tiles, num_layers); the layer axis is 'arbitrary' and the
    activations are carried across it in `x_scratch` (VMEM resident), so the
    per-layer HBM round trip of the activations is eliminated.
    Weights are pre-transposed bf16 (y = x @ W + b, f32 accumulation);
    the 1/sqrt(D) scale is pre-folded into the Q part of wqkv/bqkv.
    """
    layer = pl.program_id(1)
    num_layers = pl.num_programs(1)

    # Seed the VMEM activation carry from the HBM input at layer 0.
    @pl.when(layer == 0)
    def _():
        x_scratch[...] = x_ref[...].astype(jnp.float32)

    x = x_scratch[...]                       # (Bt, S, E) f32
    Bt, S, E = x.shape
    H = num_heads
    D = E // H

    # Packed per-layer vectors: rows = [bo, n1w, n1b, b2, n2w, n2b], each (1,E)
    bo = vec_ref[0:1, :]
    n1w = vec_ref[1:2, :]
    n1b = vec_ref[2:3, :]
    b2 = vec_ref[3:4, :]
    n2w = vec_ref[4:5, :]
    n2b = vec_ref[5:6, :]

    xr = x.reshape(Bt * S, E)
    x16 = xr.astype(jnp.bfloat16)

    def proj(lhs16, w_ref, b):
        # bf16 operands on the MXU, f32 accumulation, f32 bias add.
        return jnp.dot(lhs16, w_ref[...], preferred_element_type=jnp.float32) + b

    # ---- fused QKV projection: one MXU pass with N = 3E ---------------------
    qkv = proj(x16, wqkv_ref, bqkv_ref[...])          # (Bt*S, 3E) f32
    qkv16 = qkv.astype(jnp.bfloat16)                  # single cast, reused 3x

    def to_heads(t16):                                # (Bt*S, E) -> (Bt*H, S, D)
        t = t16.reshape(Bt, S, H, D)
        t = jnp.transpose(t, (0, 2, 1, 3))            # bf16 relayout (half bytes)
        return t.reshape(Bt * H, S, D)

    qh = to_heads(qkv16[:, 0 * E:1 * E])
    kh = to_heads(qkv16[:, 1 * E:2 * E])
    vh = to_heads(qkv16[:, 2 * E:3 * E])

    # ---- attention, batched over (batch * heads) ----------------------------
    s = jnp.einsum('bqd,bkd->bqk', qh, kh,
                   preferred_element_type=jnp.float32)          # (Bt*H, S, S)
    s = s - jnp.max(s, axis=-1, keepdims=True)
    p = jnp.exp(s)
    # approx reciprocal runs on the EUP (free slot); ~1e-3 rel. error vs exact.
    p = p * pl.reciprocal(jnp.sum(p, axis=-1, keepdims=True), approx=True)
    ctx = jnp.einsum('bqk,bkd->bqd', p.astype(jnp.bfloat16), vh,
                     preferred_element_type=jnp.float32)        # (Bt*H, S, D)

    ctx16 = ctx.astype(jnp.bfloat16).reshape(Bt, H, S, D)
    ctx16 = jnp.transpose(ctx16, (0, 2, 1, 3)).reshape(Bt * S, E)

    attn = proj(ctx16, wo_ref, bo)                               # (Bt*S, E)

    # ---- residual + LayerNorm 1 (f32) ---------------------------------------
    y = _layer_norm_f32(xr + attn, n1w, n1b)

    # ---- feed-forward: Linear -> ReLU -> Linear ------------------------------
    h1 = proj(y.astype(jnp.bfloat16), w1_ref, b1_ref[...])       # (Bt*S, 4E)
    h1 = jnp.maximum(h1, 0.0)
    h2 = proj(h1.astype(jnp.bfloat16), w2_ref, b2)               # (Bt*S, E)

    # ---- residual + LayerNorm 2 (f32) ---------------------------------------
    z = _layer_norm_f32(y + h2, n2w, n2b)

    x_scratch[...] = z.reshape(Bt, S, E)

    # Write HBM output only once, after the last layer.
    @pl.when(layer == num_layers - 1)
    def _():
        out_ref[...] = x_scratch[...].astype(out_ref.dtype)


def _prepare_params(params, num_heads):
    """Host-side weight prep: transpose to (in, out) so y = x @ W + b, keep the
    QKV projection fused, fold 1/sqrt(D) into its Q columns, cast weights to
    bf16, pack the small (E,) vectors into one (6, E) array, and stack
    everything with a leading layer axis."""
    per_layer = []
    for (wqkv, bqkv, wo, bo, n1w, n1b, w1, b1, w2, b2, n2w, n2b) in params:
        E = wo.shape[0]
        D = E // num_heads
        scale = 1.0 / float(D) ** 0.5

        wqkv_t = jnp.asarray(wqkv, jnp.float32).T                # (E, 3E)
        wqkv_t = wqkv_t.at[:, :E].multiply(scale)                # fold scale into Q
        bqkv_s = jnp.asarray(bqkv, jnp.float32).at[:E].multiply(scale)

        vecs = jnp.stack([bo, n1w, n1b, b2, n2w, n2b], axis=0)   # (6, E)

        per_layer.append((
            wqkv_t.astype(jnp.bfloat16),                         # (E, 3E) bf16
            bqkv_s.reshape(1, 3 * E).astype(jnp.float32),        # (1, 3E)
            jnp.asarray(wo).T.astype(jnp.bfloat16),              # (E, E)  bf16
            jnp.asarray(w1).T.astype(jnp.bfloat16),              # (E, 4E) bf16
            jnp.asarray(b1).reshape(1, -1).astype(jnp.float32),  # (1, 4E)
            jnp.asarray(w2).T.astype(jnp.bfloat16),              # (4E, E) bf16
            vecs.astype(jnp.float32),                            # (6, E)
        ))
    return [jnp.stack(ps, axis=0) for ps in zip(*per_layer)]


def transformer_encoder(x_sbe, params, num_heads, *, b_tile=None):
    """x_sbe: (S, B, E). params: list of per-layer PyTorch-convention tuples.
    Returns (S, B, E) in the input dtype."""
    S, B, E = x_sbe.shape
    assert E % num_heads == 0

    x = jnp.transpose(x_sbe, (1, 0, 2))                           # (B, S, E)
    stacked = _prepare_params(params, num_heads)
    num_layers = stacked[0].shape[0]

    if b_tile is None:
        # Give the 'parallel' batch axis >= 2 steps when possible so a second
        # TensorCore (v7x megacore) has work; otherwise whole batch per step.
        b_tile = B // 2 if (B % 2 == 0 and B >= 2) else B
    assert B % b_tile == 0
    nb = B // b_tile

    def param_spec(p):
        nd = p.ndim
        return pl.BlockSpec((None,) + p.shape[1:],
                            lambda b, l, _nd=nd: (l,) + (0,) * (_nd - 1))

    in_specs = [pl.BlockSpec((b_tile, S, E), lambda b, l: (b, 0, 0))]
    in_specs += [param_spec(p) for p in stacked]

    kernel = functools.partial(_encoder_stack_kernel, num_heads=num_heads)

    out = pl.pallas_call(
        kernel,
        out_shape=jax.ShapeDtypeStruct((B, S, E), x_sbe.dtype),
        grid_spec=pltpu.PrefetchScalarGridSpec(
            num_scalar_prefetch=0,
            grid=(nb, num_layers),
            in_specs=in_specs,
            out_specs=pl.BlockSpec((b_tile, S, E), lambda b, l: (b, 0, 0)),
            scratch_shapes=[pltpu.VMEM((b_tile, S, E), jnp.float32)],
        ),
        compiler_params=pltpu.CompilerParams(
            dimension_semantics=("parallel", "arbitrary"),
            vmem_limit_bytes=_vmem_limit_bytes(),
        ),
    )(x, *stacked)

    return jnp.transpose(out, (1, 0, 2))


def init_params(key, embed_dim, num_layers):
    """Deterministic synthetic initialization (shapes match the PyTorch layers,
    PyTorch convention: y = x @ W.T + b)."""
    E = embed_dim
    F = 4 * embed_dim
    params = []
    for l in range(num_layers):
        lkey = jax.random.fold_in(key, l)
        k = jax.random.split(lkey, 4)
        wqkv = 0.02 * jax.random.normal(k[0], (3 * E, E), jnp.float32)
        bqkv = jnp.zeros((3 * E,), jnp.float32)
        wo = 0.02 * jax.random.normal(k[1], (E, E), jnp.float32)
        bo = jnp.zeros((E,), jnp.float32)
        n1w = jnp.ones((E,), jnp.float32)
        n1b = jnp.zeros((E,), jnp.float32)
        w1 = 0.02 * jax.random.normal(k[2], (F, E), jnp.float32)
        b1 = jnp.zeros((F,), jnp.float32)
        w2 = 0.02 * jax.random.normal(k[3], (E, F), jnp.float32)
        b2 = jnp.zeros((E,), jnp.float32)
        n2w = jnp.ones((E,), jnp.float32)
        n2b = jnp.zeros((E,), jnp.float32)
        params.append((wqkv, bqkv, wo, bo, n1w, n1b,
                       w1, b1, w2, b2, n2w, n2b))
    return params


if __name__ == "__main__":
    embed_dim = 32
    num_heads = 4
    num_layers = 2
    seq = 8
    batch = 2

    key = jax.random.PRNGKey(0)
    k_x, k_p = jax.random.split(key)
    x = jax.random.normal(k_x, (seq, batch, embed_dim), jnp.float32)  # (S, B, E)
    params = init_params(k_p, embed_dim, num_layers)

    out = transformer_encoder(x, params, num_heads)
    out = jax.block_until_ready(out)
    assert out.shape == (seq, batch, embed_dim)
    assert jnp.all(jnp.isfinite(out))
    print("KERNEL_OK")
</pallas_src>

<mosaic_0001>
module attributes {stable_mosaic.version = 11 : i64} {
  func.func @_encoder_stack_kernel(%arg0: i32, %arg1: i32, %arg2: memref<1x8x32xf32, #tpu.memory_space<vmem>>, %arg3: memref<1x32x96xbf16, #tpu.memory_space<vmem>>, %arg4: memref<1x1x96xf32, #tpu.memory_space<vmem>>, %arg5: memref<1x32x32xbf16, #tpu.memory_space<vmem>>, %arg6: memref<1x32x128xbf16, #tpu.memory_space<vmem>>, %arg7: memref<1x1x128xf32, #tpu.memory_space<vmem>>, %arg8: memref<1x128x32xbf16, #tpu.memory_space<vmem>>, %arg9: memref<1x6x32xf32, #tpu.memory_space<vmem>>, %arg10: memref<1x8x32xf32, #tpu.memory_space<vmem>>, %arg11: memref<1x8x32xf32, #tpu.memory_space<vmem>>) attributes {dimension_semantics = [#tpu.dimension_semantics<parallel>, #tpu.dimension_semantics<arbitrary>], iteration_bounds = array<i64: 2, 2>, scalar_prefetch = 0 : i64, scratch_operands = 1 : i64, tpu.core_type = #tpu.core_type<tc>, window_params = [{transform_indices = @transform_0, window_bounds = array<i64: 1, 8, 32>}, {transform_indices = @transform_1, window_bounds = array<i64: 1, 32, 96>}, {transform_indices = @transform_2, window_bounds = array<i64: 1, 1, 96>}, {transform_indices = @transform_3, window_bounds = array<i64: 1, 32, 32>}, {transform_indices = @transform_4, window_bounds = array<i64: 1, 32, 128>}, {transform_indices = @transform_5, window_bounds = array<i64: 1, 1, 128>}, {transform_indices = @transform_6, window_bounds = array<i64: 1, 128, 32>}, {transform_indices = @transform_7, window_bounds = array<i64: 1, 6, 32>}, {transform_indices = @transform_8, window_bounds = array<i64: 1, 8, 32>}]} {
    %c0_i32 = arith.constant 0 : i32
    %0 = arith.cmpi eq, %arg1, %c0_i32 : i32
    %1 = arith.extui %0 : i1 to i32
    %c0_i32_0 = arith.constant 0 : i32
    %2 = arith.cmpi ne, %1, %c0_i32_0 : i32
    scf.if %2 {
      %c0_56 = arith.constant 0 : index
      %c0_57 = arith.constant 0 : index
      %c0_58 = arith.constant 0 : index
      %127 = vector.load %arg2[%c0_56, %c0_57, %c0_58] : memref<1x8x32xf32, #tpu.memory_space<vmem>>, vector<1x8x32xf32>
      %c0_59 = arith.constant 0 : index
      %c0_60 = arith.constant 0 : index
      %c0_61 = arith.constant 0 : index
      %128 = vector.load %arg11[%c0_59, %c0_60, %c0_61] : memref<1x8x32xf32, #tpu.memory_space<vmem>>, vector<1x8x32xf32>
      tpu.vector_store %arg11[%c0_59, %c0_60, %c0_61], %127 {strides = array<i32>} : memref<1x8x32xf32, #tpu.memory_space<vmem>>, vector<1x8x32xf32>,
    } else {
    }
    %c0 = arith.constant 0 : index
    %c0_1 = arith.constant 0 : index
    %c0_2 = arith.constant 0 : index
    %3 = vector.load %arg11[%c0, %c0_1, %c0_2] : memref<1x8x32xf32, #tpu.memory_space<vmem>>, vector<1x8x32xf32>
    %c0_3 = arith.constant 0 : index
    %c0_4 = arith.constant 0 : index
    %c0_5 = arith.constant 0 : index
    %4 = vector.load %arg9[%c0_3, %c0_4, %c0_5] : memref<1x6x32xf32, #tpu.memory_space<vmem>>, vector<1x1x32xf32>
    %5 = vector.shape_cast %4 : vector<1x1x32xf32> to vector<1x32xf32>
    %c0_6 = arith.constant 0 : index
    %c1 = arith.constant 1 : index
    %c0_7 = arith.constant 0 : index
    %6 = vector.load %arg9[%c0_6, %c1, %c0_7] : memref<1x6x32xf32, #tpu.memory_space<vmem>>, vector<1x1x32xf32>
    %7 = vector.shape_cast %6 : vector<1x1x32xf32> to vector<1x32xf32>
    %c0_8 = arith.constant 0 : index
    %c2 = arith.constant 2 : index
    %c0_9 = arith.constant 0 : index
    %8 = vector.load %arg9[%c0_8, %c2, %c0_9] : memref<1x6x32xf32, #tpu.memory_space<vmem>>, vector<1x1x32xf32>
    %9 = vector.shape_cast %8 : vector<1x1x32xf32> to vector<1x32xf32>
    %c0_10 = arith.constant 0 : index
    %c3 = arith.constant 3 : index
    %c0_11 = arith.constant 0 : index
    %10 = vector.load %arg9[%c0_10, %c3, %c0_11] : memref<1x6x32xf32, #tpu.memory_space<vmem>>, vector<1x1x32xf32>
    %11 = vector.shape_cast %10 : vector<1x1x32xf32> to vector<1x32xf32>
    %c0_12 = arith.constant 0 : index
    %c4 = arith.constant 4 : index
    %c0_13 = arith.constant 0 : index
    %12 = vector.load %arg9[%c0_12, %c4, %c0_13] : memref<1x6x32xf32, #tpu.memory_space<vmem>>, vector<1x1x32xf32>
    %13 = vector.shape_cast %12 : vector<1x1x32xf32> to vector<1x32xf32>
    %c0_14 = arith.constant 0 : index
    %c5 = arith.constant 5 : index
    %c0_15 = arith.constant 0 : index
    %14 = vector.load %arg9[%c0_14, %c5, %c0_15] : memref<1x6x32xf32, #tpu.memory_space<vmem>>, vector<1x1x32xf32>
    %15 = vector.shape_cast %14 : vector<1x1x32xf32> to vector<1x32xf32>
    %16 = vector.shape_cast %3 : vector<1x8x32xf32> to vector<8x32xf32>
    %17 = arith.truncf %16 : vector<8x32xf32> to vector<8x32xbf16>
    %c0_16 = arith.constant 0 : index
    %c0_17 = arith.constant 0 : index
    %c0_18 = arith.constant 0 : index
    %18 = vector.load %arg4[%c0_16, %c0_17, %c0_18] : memref<1x1x96xf32, #tpu.memory_space<vmem>>, vector<1x1x96xf32>
    %19 = vector.shape_cast %18 : vector<1x1x96xf32> to vector<1x96xf32>
    %c0_19 = arith.constant 0 : index
    %c0_20 = arith.constant 0 : index
    %c0_21 = arith.constant 0 : index
    %20 = vector.load %arg3[%c0_19, %c0_20, %c0_21] : memref<1x32x96xbf16, #tpu.memory_space<vmem>>, vector<1x32x96xbf16>
    %21 = vector.shape_cast %20 : vector<1x32x96xbf16> to vector<32x96xbf16>
    %cst = arith.constant dense<0.000000e+00> : vector<8x96xf32>
    %22 = tpu.matmul %17, %21, %cst {dimension_numbers = #tpu.dot_dimension_numbers<[1], [0], [0], [1], [0, 0, 1, 1], [], []>} : vector<8x32xbf16>, vector<32x96xbf16>, vector<8x96xf32> -> vector<8x96xf32>
    %23 = vector.broadcast %19 : vector<1x96xf32> to vector<8x96xf32>
    %24 = arith.addf %22, %23 : vector<8x96xf32>
    %25 = arith.truncf %24 : vector<8x96xf32> to vector<8x96xbf16>
    %26 = vector.extract_strided_slice %25 {offsets = [0, 0], sizes = [8, 32], strides = [1, 1]} : vector<8x96xbf16> to vector<8x32xbf16>
    %27 = vector.shape_cast %26 : vector<8x32xbf16> to vector<1x8x4x8xbf16>
    %28 = tpu.transpose %27, [0, 2, 1, 3] : vector<1x8x4x8xbf16> -> vector<1x4x8x8xbf16>
    %29 = vector.shape_cast %28 : vector<1x4x8x8xbf16> to vector<4x8x8xbf16>
    %30 = vector.extract_strided_slice %25 {offsets = [0, 32], sizes = [8, 32], strides = [1, 1]} : vector<8x96xbf16> to vector<8x32xbf16>
    %31 = vector.shape_cast %30 : vector<8x32xbf16> to vector<1x8x4x8xbf16>
    %32 = tpu.transpose %31, [0, 2, 1, 3] : vector<1x8x4x8xbf16> -> vector<1x4x8x8xbf16>
    %33 = vector.shape_cast %32 : vector<1x4x8x8xbf16> to vector<4x8x8xbf16>
    %34 = vector.extract_strided_slice %25 {offsets = [0, 64], sizes = [8, 32], strides = [1, 1]} : vector<8x96xbf16> to vector<8x32xbf16>
    %35 = vector.shape_cast %34 : vector<8x32xbf16> to vector<1x8x4x8xbf16>
    %36 = tpu.transpose %35, [0, 2, 1, 3] : vector<1x8x4x8xbf16> -> vector<1x4x8x8xbf16>
    %37 = vector.shape_cast %36 : vector<1x4x8x8xbf16> to vector<4x8x8xbf16>
    "tpu.trace_start"() <{level = 10 : i32, message = "bqd,bkd->bqk"}> : () -> ()
    %cst_22 = arith.constant dense<0.000000e+00> : vector<4x8x8xf32>
    %38 = tpu.matmul %29, %33, %cst_22 {dimension_numbers = #tpu.dot_dimension_numbers<[2], [2], [1], [1], [0, 0, 0, 1, 1, 1], [0], [0]>} : vector<4x8x8xbf16>, vector<4x8x8xbf16>, vector<4x8x8xf32> -> vector<4x8x8xf32>
    "tpu.trace_stop"() : () -> ()
    %cst_23 = arith.constant dense<0xFF800000> : vector<4x8xf32>
    %39 = vector.multi_reduction <maximumf>, %38, %cst_23 [2] : vector<4x8x8xf32> to vector<4x8xf32>
    %40 = vector.shape_cast %39 : vector<4x8xf32> to vector<4x8x1xf32>
    %41 = vector.broadcast %40 : vector<4x8x1xf32> to vector<4x8x8xf32>
    %42 = arith.subf %38, %41 : vector<4x8x8xf32>
    %43 = math.exp %42 : vector<4x8x8xf32>
    %cst_24 = arith.constant dense<0.000000e+00> : vector<4x8xf32>
    %44 = vector.multi_reduction <add>, %43, %cst_24 [2] : vector<4x8x8xf32> to vector<4x8xf32>
    %45 = vector.shape_cast %44 : vector<4x8xf32> to vector<4x8x1xf32>
    %46 = tpu.reciprocal %45 {approx = true} : vector<4x8x1xf32> -> vector<4x8x1xf32>
    %47 = vector.broadcast %46 : vector<4x8x1xf32> to vector<4x8x8xf32>
    %48 = arith.mulf %43, %47 : vector<4x8x8xf32>
    %49 = arith.truncf %48 : vector<4x8x8xf32> to vector<4x8x8xbf16>
    "tpu.trace_start"() <{level = 10 : i32, message = "bqk,bkd->bqd"}> : () -> ()
    %cst_25 = arith.constant dense<0.000000e+00> : vector<4x8x8xf32>
    %50 = tpu.matmul %49, %37, %cst_25 {dimension_numbers = #tpu.dot_dimension_numbers<[2], [1], [1], [2], [0, 0, 0, 1, 1, 2], [0], [0]>} : vector<4x8x8xbf16>, vector<4x8x8xbf16>, vector<4x8x8xf32> -> vector<4x8x8xf32>
    "tpu.trace_stop"() : () -> ()
    %51 = arith.truncf %50 : vector<4x8x8xf32> to vector<4x8x8xbf16>
    %52 = vector.shape_cast %51 : vector<4x8x8xbf16> to vector<1x4x8x8xbf16>
    %53 = tpu.transpose %52, [0, 2, 1, 3] : vector<1x4x8x8xbf16> -> vector<1x8x4x8xbf16>
    %54 = vector.shape_cast %53 : vector<1x8x4x8xbf16> to vector<8x32xbf16>
    %c0_26 = arith.constant 0 : index
    %c0_27 = arith.constant 0 : index
    %c0_28 = arith.constant 0 : index
    %55 = vector.load %arg5[%c0_26, %c0_27, %c0_28] : memref<1x32x32xbf16, #tpu.memory_space<vmem>>, vector<1x32x32xbf16>
    %56 = vector.shape_cast %55 : vector<1x32x32xbf16> to vector<32x32xbf16>
    %cst_29 = arith.constant dense<0.000000e+00> : vector<8x32xf32>
    %57 = tpu.matmul %54, %56, %cst_29 {dimension_numbers = #tpu.dot_dimension_numbers<[1], [0], [0], [1], [0, 0, 1, 1], [], []>} : vector<8x32xbf16>, vector<32x32xbf16>, vector<8x32xf32> -> vector<8x32xf32>
    %58 = vector.broadcast %5 : vector<1x32xf32> to vector<8x32xf32>
    %59 = arith.addf %57, %58 : vector<8x32xf32>
    %60 = arith.addf %16, %59 : vector<8x32xf32>
    %cst_30 = arith.constant dense<0.000000e+00> : vector<8xf32>
    %61 = vector.multi_reduction <add>, %60, %cst_30 [1] : vector<8x32xf32> to vector<8xf32>
    %62 = vector.shape_cast %61 : vector<8xf32> to vector<8x1xf32>
    %cst_31 = arith.constant 3.200000e+01 : f32
    %63 = vector.broadcast %cst_31 : f32 to vector<8x1xf32>
    %64 = arith.divf %62, %63 : vector<8x1xf32>
    %65 = vector.broadcast %64 : vector<8x1xf32> to vector<8x32xf32>
    %66 = arith.subf %60, %65 : vector<8x32xf32>
    %67 = arith.mulf %66, %66 : vector<8x32xf32>
    %cst_32 = arith.constant dense<0.000000e+00> : vector<8xf32>
    %68 = vector.multi_reduction <add>, %67, %cst_32 [1] : vector<8x32xf32> to vector<8xf32>
    %69 = vector.shape_cast %68 : vector<8xf32> to vector<8x1xf32>
    %cst_33 = arith.constant 3.200000e+01 : f32
    %70 = vector.broadcast %cst_33 : f32 to vector<8x1xf32>
    %71 = arith.divf %69, %70 : vector<8x1xf32>
    %72 = vector.broadcast %64 : vector<8x1xf32> to vector<8x32xf32>
    %73 = arith.subf %60, %72 : vector<8x32xf32>
    %cst_34 = arith.constant 9.99999974E-6 : f32
    %74 = vector.broadcast %cst_34 : f32 to vector<8x1xf32>
    %75 = arith.addf %71, %74 : vector<8x1xf32>
    %76 = math.rsqrt %75 : vector<8x1xf32>
    %77 = vector.broadcast %76 : vector<8x1xf32> to vector<8x32xf32>
    %78 = arith.mulf %73, %77 : vector<8x32xf32>
    %79 = vector.broadcast %7 : vector<1x32xf32> to vector<8x32xf32>
    %80 = arith.mulf %78, %79 : vector<8x32xf32>
    %81 = vector.broadcast %9 : vector<1x32xf32> to vector<8x32xf32>
    %82 = arith.addf %80, %81 : vector<8x32xf32>
    %83 = arith.truncf %82 : vector<8x32xf32> to vector<8x32xbf16>
    %c0_35 = arith.constant 0 : index
    %c0_36 = arith.constant 0 : index
    %c0_37 = arith.constant 0 : index
    %84 = vector.load %arg7[%c0_35, %c0_36, %c0_37] : memref<1x1x128xf32, #tpu.memory_space<vmem>>, vector<1x1x128xf32>
    %85 = vector.shape_cast %84 : vector<1x1x128xf32> to vector<1x128xf32>
    %c0_38 = arith.constant 0 : index
    %c0_39 = arith.constant 0 : index
    %c0_40 = arith.constant 0 : index
    %86 = vector.load %arg6[%c0_38, %c0_39, %c0_40] : memref<1x32x128xbf16, #tpu.memory_space<vmem>>, vector<1x32x128xbf16>
    %87 = vector.shape_cast %86 : vector<1x32x128xbf16> to vector<32x128xbf16>
    %cst_41 = arith.constant dense<0.000000e+00> : vector<8x128xf32>
    %88 = tpu.matmul %83, %87, %cst_41 {dimension_numbers = #tpu.dot_dimension_numbers<[1], [0], [0], [1], [0, 0, 1, 1], [], []>} : vector<8x32xbf16>, vector<32x128xbf16>, vector<8x128xf32> -> vector<8x128xf32>
    %89 = vector.broadcast %85 : vector<1x128xf32> to vector<8x128xf32>
    %90 = arith.addf %88, %89 : vector<8x128xf32>
    %cst_42 = arith.constant 0.000000e+00 : f32
    %91 = vector.broadcast %cst_42 : f32 to vector<8x128xf32>
    %92 = arith.maximumf %90, %91 : vector<8x128xf32>
    %93 = arith.truncf %92 : vector<8x128xf32> to vector<8x128xbf16>
    %c0_43 = arith.constant 0 : index
    %c0_44 = arith.constant 0 : index
    %c0_45 = arith.constant 0 : index
    %94 = vector.load %arg8[%c0_43, %c0_44, %c0_45] : memref<1x128x32xbf16, #tpu.memory_space<vmem>>, vector<1x128x32xbf16>
    %95 = vector.shape_cast %94 : vector<1x128x32xbf16> to vector<128x32xbf16>
    %cst_46 = arith.constant dense<0.000000e+00> : vector<8x32xf32>
    %96 = tpu.matmul %93, %95, %cst_46 {dimension_numbers = #tpu.dot_dimension_numbers<[1], [0], [0], [1], [0, 0, 1, 1], [], []>} : vector<8x128xbf16>, vector<128x32xbf16>, vector<8x32xf32> -> vector<8x32xf32>
    %97 = vector.broadcast %11 : vector<1x32xf32> to vector<8x32xf32>
    %98 = arith.addf %96, %97 : vector<8x32xf32>
    %99 = arith.addf %82, %98 : vector<8x32xf32>
    %cst_47 = arith.constant dense<0.000000e+00> : vector<8xf32>
    %100 = vector.multi_reduction <add>, %99, %cst_47 [1] : vector<8x32xf32> to vector<8xf32>
    %101 = vector.shape_cast %100 : vector<8xf32> to vector<8x1xf32>
    %cst_48 = arith.constant 3.200000e+01 : f32
    %102 = vector.broadcast %cst_48 : f32 to vector<8x1xf32>
    %103 = arith.divf %101, %102 : vector<8x1xf32>
    %104 = vector.broadcast %103 : vector<8x1xf32> to vector<8x32xf32>
    %105 = arith.subf %99, %104 : vector<8x32xf32>
    %106 = arith.mulf %105, %105 : vector<8x32xf32>
    %cst_49 = arith.constant dense<0.000000e+00> : vector<8xf32>
    %107 = vector.multi_reduction <add>, %106, %cst_49 [1] : vector<8x32xf32> to vector<8xf32>
    %108 = vector.shape_cast %107 : vector<8xf32> to vector<8x1xf32>
    %cst_50 = arith.constant 3.200000e+01 : f32
    %109 = vector.broadcast %cst_50 : f32 to vector<8x1xf32>
    %110 = arith.divf %108, %109 : vector<8x1xf32>
    %111 = vector.broadcast %103 : vector<8x1xf32> to vector<8x32xf32>
    %112 = arith.subf %99, %111 : vector<8x32xf32>
    %cst_51 = arith.constant 9.99999974E-6 : f32
    %113 = vector.broadcast %cst_51 : f32 to vector<8x1xf32>
    %114 = arith.addf %110, %113 : vector<8x1xf32>
    %115 = math.rsqrt %114 : vector<8x1xf32>
    %116 = vector.broadcast %115 : vector<8x1xf32> to vector<8x32xf32>
    %117 = arith.mulf %112, %116 : vector<8x32xf32>
    %118 = vector.broadcast %13 : vector<1x32xf32> to vector<8x32xf32>
    %119 = arith.mulf %117, %118 : vector<8x32xf32>
    %120 = vector.broadcast %15 : vector<1x32xf32> to vector<8x32xf32>
    %121 = arith.addf %119, %120 : vector<8x32xf32>
    %122 = vector.shape_cast %121 : vector<8x32xf32> to vector<1x8x32xf32>
    %c0_52 = arith.constant 0 : index
    %c0_53 = arith.constant 0 : index
    %c0_54 = arith.constant 0 : index
    %123 = vector.load %arg11[%c0_52, %c0_53, %c0_54] : memref<1x8x32xf32, #tpu.memory_space<vmem>>, vector<1x8x32xf32>
    tpu.vector_store %arg11[%c0_52, %c0_53, %c0_54], %122 {strides = array<i32>} : memref<1x8x32xf32, #tpu.memory_space<vmem>>, vector<1x8x32xf32>,
    %c1_i32 = arith.constant 1 : i32
    %124 = arith.cmpi eq, %arg1, %c1_i32 : i32
    %125 = arith.extui %124 : i1 to i32
    %c0_i32_55 = arith.constant 0 : i32
    %126 = arith.cmpi ne, %125, %c0_i32_55 : i32
    scf.if %126 {
      %c0_56 = arith.constant 0 : index
      %c0_57 = arith.constant 0 : index
      %c0_58 = arith.constant 0 : index
      %127 = vector.load %arg11[%c0_56, %c0_57, %c0_58] : memref<1x8x32xf32, #tpu.memory_space<vmem>>, vector<1x8x32xf32>
      %c0_59 = arith.constant 0 : index
      %c0_60 = arith.constant 0 : index
      %c0_61 = arith.constant 0 : index
      %128 = vector.load %arg10[%c0_59, %c0_60, %c0_61] : memref<1x8x32xf32, #tpu.memory_space<vmem>>, vector<1x8x32xf32>
      tpu.vector_store %arg10[%c0_59, %c0_60, %c0_61], %127 {strides = array<i32>} : memref<1x8x32xf32, #tpu.memory_space<vmem>>, vector<1x8x32xf32>,
    } else {
    }
    return
  }
  func.func @transform_0(%arg0: i32, %arg1: i32) -> (i32, i32, i32) {
    %c0_i32 = arith.constant 0 : i32
    %c0_i32_0 = arith.constant 0 : i32
    %c0_i32_1 = arith.constant 0 : i32
    return %arg0, %c0_i32, %c0_i32_0 : i32, i32, i32
  }
  func.func @transform_1(%arg0: i32, %arg1: i32) -> (i32, i32, i32) {
    %c0_i32 = arith.constant 0 : i32
    %c0_i32_0 = arith.constant 0 : i32
    %c0_i32_1 = arith.constant 0 : i32
    return %arg1, %c0_i32, %c0_i32_0 : i32, i32, i32
  }
  func.func @transform_2(%arg0: i32, %arg1: i32) -> (i32, i32, i32) {
    %c0_i32 = arith.constant 0 : i32
    %c0_i32_0 = arith.constant 0 : i32
    %c0_i32_1 = arith.constant 0 : i32
    return %arg1, %c0_i32, %c0_i32_0 : i32, i32, i32
  }
  func.func @transform_3(%arg0: i32, %arg1: i32) -> (i32, i32, i32) {
    %c0_i32 = arith.constant 0 : i32
    %c0_i32_0 = arith.constant 0 : i32
    %c0_i32_1 = arith.constant 0 : i32
    return %arg1, %c0_i32, %c0_i32_0 : i32, i32, i32
  }
  func.func @transform_4(%arg0: i32, %arg1: i32) -> (i32, i32, i32) {
    %c0_i32 = arith.constant 0 : i32
    %c0_i32_0 = arith.constant 0 : i32
    %c0_i32_1 = arith.constant 0 : i32
    return %arg1, %c0_i32, %c0_i32_0 : i32, i32, i32
  }
  func.func @transform_5(%arg0: i32, %arg1: i32) -> (i32, i32, i32) {
    %c0_i32 = arith.constant 0 : i32
    %c0_i32_0 = arith.constant 0 : i32
    %c0_i32_1 = arith.constant 0 : i32
    return %arg1, %c0_i32, %c0_i32_0 : i32, i32, i32
  }
  func.func @transform_6(%arg0: i32, %arg1: i32) -> (i32, i32, i32) {
    %c0_i32 = arith.constant 0 : i32
    %c0_i32_0 = arith.constant 0 : i32
    %c0_i32_1 = arith.constant 0 : i32
    return %arg1, %c0_i32, %c0_i32_0 : i32, i32, i32
  }
  func.func @transform_7(%arg0: i32, %arg1: i32) -> (i32, i32, i32) {
    %c0_i32 = arith.constant 0 : i32
    %c0_i32_0 = arith.constant 0 : i32
    %c0_i32_1 = arith.constant 0 : i32
    return %arg1, %c0_i32, %c0_i32_0 : i32, i32, i32
  }
  func.func @transform_8(%arg0: i32, %arg1: i32) -> (i32, i32, i32) {
    %c0_i32 = arith.constant 0 : i32
    %c0_i32_0 = arith.constant 0 : i32
    %c0_i32_1 = arith.constant 0 : i32
    return %arg0, %c0_i32, %c0_i32_0 : i32, i32, i32
  }
}

</mosaic_0001>

<bundles_post_ra>
// kernel: tpu_custom_call.1
= control target key start
LH: loop header
LB: loop body
LE: loop exit
PB: predicated region body
PF: predicated region fallthrough
CT: control target
= control target key end

     0   :  { %s2973_s0 = inlined_call_operand.vmem [shape: f32[2,8,32], index: 0, kind: input, shape index: {}]   ;;  %s2974_s1 = inlined_call_operand.vmem [shape: bf16[2,32,96], index: 1, kind: input, shape index: {}]   ;;  %s2975_s2 = inlined_call_operand.vmem [shape: f32[2,1,96], index: 2, kind: input, shape index: {}]   ;;  %s2976_s3 = inlined_call_operand.vmem [shape: bf16[2,32,32], index: 3, kind: input, shape index: {}]   ;;  %s2977_s4 = inlined_call_operand.vmem [shape: bf16[2,32,128], index: 4, kind: input, shape index: {}]   ;;  %s2978_s5 = inlined_call_operand.vmem [shape: f32[2,1,128], index: 5, kind: input, shape index: {}]   ;;  %s2979_s6 = inlined_call_operand.vmem [shape: bf16[2,128,32], index: 6, kind: input, shape index: {}]   ;;  %s2980_s7 = inlined_call_operand.vmem [shape: f32[2,6,32], index: 7, kind: input, shape index: {}]   ;;  %s2981_s8 = inlined_call_operand.hbm [shape: f32[2,8,32], index: 8, kind: output, shape index: {}]  }
   0x1   :  { %2992 = sst [smem:[#allocation15_spill]] %s2973_s0 }
   0x2   :  { %2993 = sst [smem:[#allocation16_spill]] %s2974_s1 }
   0x3   :  { %2994 = sst [smem:[#allocation17_spill]] %s2981_s8 }
   0x4   :  { %13 = vsyncpa [#allocation4], 0 }
   0x5   :  { %15 = vsyncpa [#allocation4 + $0x1], 0  ;;  %s2540_s27 = smov 0   ;;  %s2542_s28 = smov 0  }
   0x6   :  { %s2544_s29 = smov 0   ;;  %s2546_s30 = smov 0  }
   0x7   :  { %s2548_s9 = smov 0   ;;  %s2550_s10 = smov 0  }
   0x8   :  { %s2552_s11 = smov 0   ;;  %s2554_s12 = smov 0  }
   0x9 LB: > { %2995 = sst [smem:[#allocation6_spill]] %s2451_s27  ;;  %s2082_s13 = sadd.s32 4294967295, %s2479_s12   ;;  %s2479_s12 = sphi %s2554_s12, %s21_s12   ;;  %s2475_s11 = sphi %s2552_s11, %s3020_s11   ;;  %s2471_s10 = sphi %s2550_s10, %s3019_s10   ;;  %s2467_s9 = sphi %s2548_s9, %s3018_s9   ;;  %s2463_s30 = sphi %s2546_s30, %s3017_s30   ;;  %s2459_s29 = sphi %s2544_s29, %s3016_s29   ;;  %s2455_s28 = sphi %s2542_s28, %s3022_s28   ;;  %s2451_s27 = sphi %s2540_s27, %s3021_s27  }
   0xa   : > { %2996 = sst [smem:[#allocation7_spill]] %s2459_s29  ;;  %s2083_s14 = sadd.s32 4294967294, %s2479_s12  }
   0xb   : > { %2997 = sst [smem:[#allocation8_spill]] %s2471_s10  ;;  %s30_s15 = sadd.s32 1, %s2471_s10 }
   0xc   : > { %2998 = sst [smem:[#allocation9_spill]] %s2475_s11  ;;  %p31_p0 = scmp.ge.s32.totalorder %s30_s15, 2 }
   0xd   : > { %2999 = sst [smem:[#allocation10_spill]] %s2479_s12  ;;  %s33_s16 = sadd.s32 1, %s2475_s11 }
   0xe   : > { %p258_p1 = scmp.ne.s32.totalorder %s2459_s29, %s2455_s28  ;;  %p259_p2 = scmp.eq.s32.totalorder %s2082_s13, 3 }
   0xf   : > { %s3024_s15 = smov (%p31_p0, %s30_s15), 0  ;;  %s3026_s16 = smov (!%p31_p0, %s33_s16), %s2475_s11 }
  0x10   : > { %3000 = sst [smem:[#allocation11_spill]] %s3024_s15  ;;  %p2589_p3 = por %p259_p2, %p258_p1 }
  0x11   : > { %p264_p4 = scmp.ne.s32.totalorder %s2455_s28, %s2451_s27  ;;  %p35_p5 = scmp.ge.s32.totalorder %s3026_s16, 2 }
  0x12   : > { %p265_p6 = scmp.eq.s32.totalorder %s2083_s14, 3  ;;  %p2086_p7 = scmp.ge.s32.totalorder %s2479_s12, 1 }
  0x13   : > { %p341_p8 = scmp.lt.s32.totalorder %s2479_s12, 5  ;;  %s3028_s16 = smov (%p35_p5, %s3026_s16), 0 }
  0x14   : > { %3002 = sst [smem:[#allocation12_spill]] %s3028_s16  ;;  %p2599_p9 = por %p265_p6, %p264_p4 }
  0x15   : > { %p342_p10 = pnand %p2086_p7, %p341_p8  ;;  %s245_s19 = ssub.s32 %s2475_s11, %s3028_s16 }
  0x16   : > { %s3003_s18 = scalar_select %p2599_p9, 1, 0 }
  0x17   : > { %s248_s20 = sadd.s32 1, %s2459_s29  ;;  %p246_p11 = scmp.eq.s32.totalorder %s245_s19, 0 }
  0x18   : > { %3004 = sst [smem:[#allocation13_spill]] %s3003_s18  ;;  %345 = sbr.rel (%p342_p10) target bundleno = 2792 (0xae8), region = 52 }
  0x19   : > { %s2607_s21 = scalar_select %p246_p11, %s2459_s29, %s248_s20  }
  0x1a   : > { %s2983_s22 = sand.u32 (!%p342_p10), 1, %s2455_s28   ;;  %p404_p12 = scmp.lt.s32.totalorder (!%p342_p10), %s2467_s9, 1 }
  0x1b   : > { %3005 = sst [smem:[#allocation14_spill]] %s2607_s21  ;;  %s2613_s23 = sshll.u32 (!%p342_p10), %s2983_s22, 3 }
  0x1c   : > { %p408_p13 = scmp.lt.s32.totalorder (!%p342_p10), %s2463_s30, 1  ;;  %s3006_s0 = sld [smem:[#allocation15_spill]] (!%p342_p10) }
  0x1d   : > { %s3007_s1 = sld [smem:[#allocation16_spill]] (!%p342_p10)  ;;  %p2098_p0 = scmp.ne.s32.totalorder (!%p342_p10), %s2463_s30, 0 }
  0x1f   : > { %s405_s24 = scalar_select %p404_p12, %s2467_s9, 1 }
  0x20   : > { %s2618_s25 = scalar_select %p408_p13, %s2463_s30, 1 }
  0x21   : > { %s2088_s26 = sshll.u32 %s405_s24, 3  ;;  %442 = sbr.rel (%p2098_p0) target bundleno = 40 (0x28), region = 56  ;;  %vm444_vm0 = vcmask (!%p2098_p0), 261120  }
  0x22   : > { %s407_s19 = scalar_lea.vmem %s3006_s0, %s2088_s26  ;;  %s2137_s20 = sshll.u32 %s2618_s25, 4 }
  0x23   : > { %s412_s22 = scalar_lea.vmem %s3007_s1, %s2137_s20  ;;  %s2634_s27 = scalar_lea.vmem %s2976_s3, %s2137_s20  ;;  %v443_v0 = vld [vmem:[%s407_s19] sm:$0xff] (!%p2098_p0) }
  0x24   : > { %s2639_s8 = scalar_lea.vmem %s2977_s4, %s2137_s20  ;;  %s428_s14 = scalar_lea.vmem %s2978_s5, %s2618_s25  ;;  %445 = vst.msk [vmem:[#allocation2] sm:$0xff] (!%p2098_p0), %vm444_vm0, %v443_v0 }
  0x25   : > { %s2140_s15 = sshll.u32 %s2618_s25, 6  ;;  %s2097_s11 = sshll.u32 %s2618_s25, 3 }
  0x26   : > { %s2649_s10 = scalar_lea.vmem %s2979_s6, %s2140_s15  ;;  %s2655_s18 = scalar_lea.vmem %s2980_s7, %s2097_s11 }
  0x27   : > { %s403_s1 = scalar_lea.vmem [#allocation3], %s2613_s23 }
  0x28 PF: > { %v2351_v1 = vld [vmem:[%s412_s22] sm:$0xff]   ;;  %v2481_v2 = vmov 0.0   ;;  %v2352_v3 = vld [vmem:[%s412_s22 + $0x8] sm:$0xff]   ;;  %vm2482_vm1 = vmmov 0   ;;  %vm477_vm2 = vcmask 261120   ;;  %s3008_s21 = scalar_lea.vmem %s2975_s2, %s2618_s25  ;;  %s2483_s22 = smov 104   ;;  %v532_v18 = vlaneseq }
  0x29   : > { %2175 = vmatprep.subr.bf16.mxu0 %v2481_v2  ;;  %2195 = vmatprep.subr.bf16.mxu1 %v2481_v2  ;;  %v2099_v6 = vld [vmem:[%s3008_s21] ss:$0 sm:$0xff]  ;;  %s2484_s19 = smov 120   ;;  %s2485_s20 = smov 96   ;;  %v2487_v16 = vmov 1983009808  }
  0x2a   : > { %2176 = vmatpush3.bf16.msra.mxu0 %v2351_v1  ;;  %2179 = vmatprep.mubr.msk.bf16.mxu0 %vm2482_vm1, %v2481_v2  ;;  %s2486_s24 = smov 112   ;;  %v530_v17 = vunpack.c.l.s4 %v2487_v16  ;;  %v533_v20 = vshrl.u32 %v532_v18, 7  ;;  %v2488_v21 = vmov 1934713408   ;;  %v2489_v40 = vmov 0   ;;  %s2490_s26 = smov 64  }
  0x2b   : > { %v2663_v4 = vld [vmem:[#allocation2] sm:$0xff]  ;;  %2177 = vmatprep.subr.bf16.mxu0 %v2481_v2  ;;  %2197 = vmatprep.mubr.msk.bf16.mxu1 %vm2482_vm1, %v2481_v2  ;;  %v547_v22 = vunpack.c.l.s4 %v2488_v21  ;;  %vm1030_vm3 = vcmask 64512   ;;  %vm1266_vm4 = vcmask 1043456   ;;  %s2492_s13 = smov 16   ;;  %s2493_s15 = smov 24   ;;  %vm1619_vm5 = vcmask 130048  }
  0x2c   : > { %v453_v5 = vpack.c.bf16 %v2663_v4, %v2663_v4  ;;  %v531_v19 = vunpack.c.0.s8 %v530_v17  ;;  %vm1622_vm6 = vcmask 195584   ;;  %p2132_p1 = scmp.ne.s32.totalorder %s2463_s30, 1 }
  0x2d   : > { %v548_v26 = vunpack.c.0.s8 %v547_v22 }
  0x2e   : > { %2178 = vmatpush3.bf16.msra.mxu0 %v2352_v3  ;;  %v2694_v23 = vsub.s32 %v531_v19, %v533_v20 }
  0x2f   : > { %2183 = vmatprep.subr.bf16.mxu0 %v2481_v2  ;;  %v2704_v31 = vsub.s32 %v548_v26, %v533_v20 }
  0x31   : > { %2180 = vmatmul.mubr.msk.bf16.vlgmr.msra.gmra.mrb[0].mxu0 %vm477_vm2, %v453_v5 }
  0x32   : > { %2185 = vmatprep.mubr.msk.bf16.mxu0 %vm2482_vm1, %v2481_v2 }
 0x104   : > { %v515_v7 = vpop.f32.mrb[0].mxu0 }
 0x105   : > { %v516_v8 = vadd.f32 %v2099_v6, %v515_v7  ;;  %v2181_v9 = vpop.f32.mrb[1].mxu0 }
 0x106   : > { %v518_v10 = vpop.f32.mrb[2].mxu0 }
 0x107   : > { %v2679_v11 = vpack.c.bf16 %v516_v8, %v516_v8  ;;  %v2182_v12 = vpop.f32.mrb[3].mxu0 }
 0x109   : > { %527 = vrot.lane.b32.xlu1 %v2679_v11, %s2483_s22  ;;  %523 = vrot.lane.b32.xlu0 %v2679_v11, %s2484_s19  ;;  %v535_v28 = vrot.slane %v2679_v11, %v2694_v23 }
 0x10d   : > { %690 = vrot.lane.b32.xlu1 %v2679_v11, %s2485_s20  ;;  %525 = vrot.lane.b32.xlu0 %v2679_v11, %s2486_s24 }
 0x17b   : > { %v2685_v13 = vpop.permute.xlu0 %523  ;;  %v2688_v14 = vpop.permute.xlu1 %527 }
 0x17c   : > { %692 = vrot.lane.b32.xlu0 %v2685_v13, %s2485_s20  ;;  %v577_v25 = vrot.slane %v2688_v14, %v2694_v23  ;;  %v569_v27 = vrot.slane %v2685_v13, %v2694_v23 }
 0x17e   : > { %v578_v32 = vcombine.low %v569_v27, %v577_v25  ;;  %v579_v33 = vcombine.high %v569_v27, %v577_v25 }
 0x17f   : > { %v2690_v15 = vpop.permute.xlu0 %525  ;;  %v691_v39 = vpop.permute.xlu1 %690 }
 0x180   : > { %696 = vrot.lane.b32.xlu0 %v2688_v14, %s2485_s20  ;;  %694 = vrot.lane.b32.xlu1 %v2690_v15, %s2485_s20  ;;  %v543_v24 = vrot.slane %v2690_v15, %v2694_v23  ;;  %v2713_v36 = vrot.slane %v578_v32, %v2704_v31  ;;  %v2716_v37 = vrot.slane %v579_v33, %v2704_v31 }
 0x181   : > { %v705_v45 = vrot.slane %v691_v39, %v2694_v23 }
 0x182   : > { %v544_v29 = vcombine.low %v535_v28, %v543_v24  ;;  %v545_v30 = vcombine.high %v535_v28, %v543_v24  ;;  %v594_v43 = vcombine.high %v2713_v36, %v2489_v40  ;;  %v595_v44 = vcombine.high %v2716_v37, %v2489_v40 }
 0x183   : > { %v601_v48 = vshrl.u32 %v2713_v36, 16  ;;  %v617_v53 = vshrl.u32 %v2716_v37, 16 }
 0x184   : > { %v2707_v34 = vrot.slane %v544_v29, %v2704_v31  ;;  %v2710_v35 = vrot.slane %v545_v30, %v2704_v31  ;;  %v609_v57 = vshrl.u32 %v594_v43, 16  ;;  %v625_v58 = vshrl.u32 %v595_v44, 16 }
 0x186   : > { %v560_v41 = vcombine.high %v2707_v34, %v2489_v40  ;;  %v561_v42 = vcombine.high %v2710_v35, %v2489_v40  ;;  %v600_v46 = vshrl.u32 %v2707_v34, 16  ;;  %v616_v49 = vshrl.u32 %v2710_v35, 16 }
 0x187   : > { %v598_v33 = vpack.i.b16 %v2713_v36, %v2707_v34 }
 0x188   : > { %v608_v54 = vshrl.u32 %v560_v41, 16  ;;  %v624_v55 = vshrl.u32 %v561_v42, 16  ;;  %v602_v61 = vpack.i.b16 %v601_v48, %v600_v46  ;;  %v606_v62 = vpack.i.b16 %v594_v43, %v560_v41 }
 0x189   : > { %v618_v1 = vpack.i.b16 %v617_v53, %v616_v49  ;;  %v622_v3 = vpack.i.b16 %v595_v44, %v561_v42  ;;  %v614_v42 = vpack.i.b16 %v2716_v37, %v2710_v35 }
 0x18a   : > { %v610_v7 = vpack.i.b16 %v609_v57, %v608_v54  ;;  %v626_v8 = vpack.i.b16 %v625_v58, %v624_v55 }
 0x18b   : > { %v636_v48 = vcombine.low %v606_v62, %v622_v3  ;;  %v653_v49 = vcombine.low %v602_v61, %v618_v1  ;;  %v628_v53 = vcombine.low %v598_v33, %v614_v42 }
 0x18c   : > { %v661_v43 = vcombine.low %v610_v7, %v626_v8 }
 0x18d   : > { %v643_v37 = vrot.slane %v636_v48, %v2694_v23  ;;  %v660_v55 = vrot.slane %v653_v49, %v2694_v23  ;;  %v635_v58 = vrot.slane %v628_v53, %v2694_v23 }
 0x18e   : > { %v668_v34 = vrot.slane %v661_v43, %v2694_v23 }
 0x18f   : > { %v644_v61 = vcombine.low %v635_v58, %v643_v37 }
 0x191   : > { %v651_v8 = vrot.slane %v644_v61, %v2704_v31 }
 0x1ee   : > { %v693_v38 = vpop.permute.xlu0 %692 }
 0x1ef   : > { %v739_v50 = vrot.slane %v693_v38, %v2694_v23 }
 0x1f2   : > { %v697_v47 = vpop.permute.xlu0 %696  ;;  %v695_v51 = vpop.permute.xlu1 %694 }
 0x1f3   : > { %v747_v52 = vrot.slane %v697_v47, %v2694_v23  ;;  %v713_v56 = vrot.slane %v695_v51, %v2694_v23 }
 0x1f5   : > { %v748_v59 = vcombine.low %v739_v50, %v747_v52  ;;  %v749_v60 = vcombine.high %v739_v50, %v747_v52  ;;  %v714_v63 = vcombine.low %v705_v45, %v713_v56  ;;  %v715_v0 = vcombine.high %v705_v45, %v713_v56 }
 0x1f7   : > { %v756_v5 = vrot.slane %v748_v59, %v2704_v31  ;;  %v763_v6 = vrot.slane %v749_v60, %v2704_v31  ;;  %v722_v9 = vrot.slane %v714_v63, %v2704_v31  ;;  %v729_v10 = vrot.slane %v715_v0, %v2704_v31 }
 0x1f8   : > { %v669_v60 = vcombine.low %v660_v55, %v668_v34 }
 0x1f9   : > { %v764_v12 = vcombine.high %v756_v5, %v2489_v40  ;;  %v765_v16 = vcombine.high %v763_v6, %v2489_v40  ;;  %v771_v17 = vshrl.u32 %v756_v5, 16  ;;  %v787_v18 = vshrl.u32 %v763_v6, 16 }
 0x1fa   : > { %v730_v19 = vcombine.high %v722_v9, %v2489_v40  ;;  %v731_v20 = vcombine.high %v729_v10, %v2489_v40  ;;  %v770_v21 = vshrl.u32 %v722_v9, 16  ;;  %v786_v22 = vshrl.u32 %v729_v10, 16 }
 0x1fb   : > { %v768_v24 = vpack.i.b16 %v756_v5, %v722_v9  ;;  %v779_v25 = vshrl.u32 %v764_v12, 16  ;;  %v784_v26 = vpack.i.b16 %v763_v6, %v729_v10  ;;  %v795_v27 = vshrl.u32 %v765_v16, 16 }
 0x1fc   : > { %v778_v28 = vshrl.u32 %v730_v19, 16  ;;  %v794_v29 = vshrl.u32 %v731_v20, 16  ;;  %v772_v30 = vpack.i.b16 %v771_v17, %v770_v21  ;;  %v776_v32 = vpack.i.b16 %v764_v12, %v730_v19 }
 0x1fd   : > { %v788_v38 = vpack.i.b16 %v787_v18, %v786_v22  ;;  %v792_v39 = vpack.i.b16 %v765_v16, %v731_v20  ;;  %v798_v41 = vcombine.low %v768_v24, %v784_v26  ;;  %v676_v5 = vrot.slane %v669_v60, %v2704_v31 }
 0x1fe   : > { %v780_v44 = vpack.i.b16 %v779_v25, %v778_v28  ;;  %v796_v45 = vpack.i.b16 %v795_v27, %v794_v29  ;;  %v652_v17 = vcombine.high %v651_v8, %v2489_v40  ;;  %v681_v24 = vshrl.u32 %v651_v8, 16 }
 0x1ff   : > { %v806_v46 = vcombine.low %v776_v32, %v792_v39  ;;  %v823_v47 = vcombine.low %v772_v30, %v788_v38  ;;  %v805_v51 = vrot.slane %v798_v41, %v2694_v23  ;;  %v677_v12 = vcombine.high %v676_v5, %v2489_v40 }
 0x200   : > { %v831_v50 = vcombine.low %v780_v44, %v796_v45  ;;  %v680_v16 = vpack.i.b16 %v676_v5, %v651_v8  ;;  %v682_v22 = vshrl.u32 %v676_v5, 16  ;;  %v687_v29 = vshrl.u32 %v652_v17, 16 }
 0x201   : > { %v813_v52 = vrot.slane %v806_v46, %v2694_v23  ;;  %v830_v36 = vrot.slane %v823_v47, %v2694_v23  ;;  %v686_v20 = vpack.i.b16 %v677_v12, %v652_v17  ;;  %v688_v28 = vshrl.u32 %v677_v12, 16 }
 0x202   : > { %v838_v54 = vrot.slane %v831_v50, %v2694_v23  ;;  %v683_v26 = vpack.i.b16 %v682_v22, %v681_v24 }
 0x203   : > { %v814_v35 = vcombine.low %v805_v51, %v813_v52  ;;  %v689_v30 = vpack.i.b16 %v688_v28, %v687_v29 }
 0x204   : > { %v839_v56 = vcombine.low %v830_v36, %v838_v54 }
 0x205   : > { %v821_v57 = vrot.slane %v814_v35, %v2704_v31 }
 0x206   : > { %v846_v59 = vrot.slane %v839_v56, %v2704_v31 }
 0x207   : > { %v822_v63 = vcombine.high %v821_v57, %v2489_v40  ;;  %v851_v9 = vshrl.u32 %v821_v57, 16 }
 0x208   : > { %v850_v62 = vpack.i.b16 %v846_v59, %v821_v57  ;;  %v847_v0 = vcombine.high %v846_v59, %v2489_v40  ;;  %v852_v6 = vshrl.u32 %v846_v59, 16 }
 0x209   : > { %v857_v21 = vshrl.u32 %v822_v63, 16 }
 0x20a   : > { %v1035_v1 = vsel %vm1030_vm3, %v850_v62, 0  ;;  %v856_v3 = vpack.i.b16 %v847_v0, %v822_v63  ;;  %v853_v10 = vpack.i.b16 %v852_v6, %v851_v9  ;;  %v858_v18 = vshrl.u32 %v847_v0, 16 }
 0x20b   : > { %2184 = vmatpush3.bf16.xpose.msra.mxu0 %v1035_v1 }
 0x20c   : > { %v1127_v7 = vsel %vm1030_vm3, %v856_v3, 0  ;;  %2189 = vmatprep.subr.bf16.mxu0 %v2481_v2  ;;  %v1081_v19 = vsel %vm1030_vm3, %v853_v10, 0  ;;  %v859_v25 = vpack.i.b16 %v858_v18, %v857_v21 }
 0x20d   : > { %2196 = vmatpush3.bf16.xpose.msra.mxu1 %v1127_v7 }
 0x20e   : > { %2207 = vmatprep.subr.bf16.mxu1 %v2481_v2  ;;  %v1173_v27 = vsel %vm1030_vm3, %v859_v25, 0 }
 0x212   : > { %2186 = vmatmul.mubr.msk.bf16.vlgmr.msra.gmra.mrb[4].mxu0 %vm1030_vm3, %v680_v16 }
 0x213   : > { %2190 = vmatpush3.bf16.xpose.msra.mxu0 %v1081_v19  ;;  %2191 = vmatprep.mubr.msk.bf16.mxu0 %vm2482_vm1, %v2481_v2 }
 0x214   : > { %2198 = vmatmul.mubr.msk.bf16.vlgmr.msra.gmra.mrb[0].mxu1 %vm1030_vm3, %v686_v20  ;;  %2201 = vmatprep.subr.bf16.mxu0 %v2481_v2 }
 0x215   : > { %2209 = vmatprep.mubr.msk.bf16.mxu1 %vm2482_vm1, %v2481_v2 }
 0x21a   : > { %2192 = vmatmul.mubr.msk.bf16.vlgmr.msra.gmra.mrb[8].mxu0 %vm1030_vm3, %v683_v26 }
 0x21b   : > { %2202 = vmatpush3.bf16.xpose.msra.mxu0 %v1173_v27  ;;  %2203 = vmatprep.mubr.msk.bf16.mxu0 %vm2482_vm1, %v2481_v2 }
 0x21c   : > { %2213 = vmatprep.subr.bf16.mxu0 %v2481_v2 }
 0x222   : > { %2204 = vmatmul.mubr.msk.bf16.vlgmr.msra.gmra.mrb[12].mxu0 %vm1030_vm3, %v689_v30 }
 0x223   : > { %2215 = vmatprep.mubr.msk.bf16.mxu0 %vm2482_vm1, %v2481_v2 }
 0x2e5   : > { %v1071_v32 = vpop.f32.mrb[4].mxu0 }
 0x2e6   : > { %v2187_v33 = vpop.f32.mrb[5].mxu0  ;;  %v1215_v38 = vsel %vm1030_vm3, %v1071_v32, -inf }
 0x2e7   : > { %v1163_v39 = vpop.f32.mrb[0].mxu1  ;;  %1216 = vmax.xlane.f32.xlu1 %v1215_v38  ;;  %v1074_v41 = vpop.f32.mrb[6].mxu0 }
 0x2e8   : > { %v2188_v42 = vpop.f32.mrb[7].mxu0  ;;  %v2199_v43 = vpop.f32.mrb[1].mxu1  ;;  %v1221_v44 = vsel %vm1030_vm3, %v1163_v39, -inf }
 0x2e9   : > { %1222 = vmax.xlane.f32.xlu0 %v1221_v44  ;;  %v1166_v45 = vpop.f32.mrb[2].mxu1 }
 0x2ea   : > { %v2200_v46 = vpop.f32.mrb[3].mxu1 }
 0x2ed   : > { %v1117_v47 = vpop.f32.mrb[8].mxu0 }
 0x2ee   : > { %v2193_v48 = vpop.f32.mrb[9].mxu0  ;;  %v1218_v49 = vsel %vm1030_vm3, %v1117_v47, -inf }
 0x2ef   : > { %1219 = vmax.xlane.f32.xlu0 %v1218_v49  ;;  %v1120_v50 = vpop.f32.mrb[10].mxu0 }
 0x2f0   : > { %v2194_v51 = vpop.f32.mrb[11].mxu0 }
 0x2f5   : > { %v1209_v52 = vpop.f32.mrb[12].mxu0 }
 0x2f6   : > { %v2205_v53 = vpop.f32.mrb[13].mxu0  ;;  %v1224_v34 = vsel %vm1030_vm3, %v1209_v52, -inf }
 0x2f7   : > { %1225 = vmax.xlane.f32.xlu1 %v1224_v34  ;;  %v1212_v36 = vpop.f32.mrb[14].mxu0 }
 0x2f8   : > { %v2206_v54 = vpop.f32.mrb[15].mxu0 }
 0x305   : > { %860 = vrot.lane.b32.xlu0 %v2679_v11, %s2490_s26 }
 0x308   : > { %862 = vrot.lane.b32.xlu1 %v2685_v13, %s2490_s26 }
 0x374   : > { %v1217_v35 = vpop.xlane.xlu1 %1216 }
 0x375   : > { %v1227_v37 = vsub.f32 %v1071_v32, %v1217_v35 }
 0x376   : > { %v1223_v56 = vpop.xlane.xlu0 %1222 }
 0x377   : > { %v1231_v55 = vmul.f32 1.442695, %v1227_v37  ;;  %v1229_v1 = vsub.f32 %v1163_v39, %v1223_v56 }
 0x379   : > { %2365 = vpow2.f32 %v1231_v55  ;;  %v1235_v3 = vmul.f32 1.442695, %v1229_v1 }
 0x37c   : > { %v1220_v57 = vpop.xlane.xlu0 %1219 }
 0x37d   : > { %v1228_v58 = vsub.f32 %v1117_v47, %v1220_v57 }
 0x37f   : > { %v1233_v59 = vmul.f32 1.442695, %v1228_v58 }
 0x381   : > { %2367 = vpow2.f32 %v1233_v59 }
 0x383   : > { %v2788_v60 = vpop.eup %2365 }
 0x384   : > { %v1239_v61 = vsel %vm1030_vm3, %v2788_v60, 0.0  ;;  %v1226_v13 = vpop.xlane.xlu1 %1225 }
 0x385   : > { %1240 = vadd.xlane.f32.xlu0 %v1239_v61  ;;  %v1230_v63 = vsub.f32 %v1209_v52, %v1226_v13 }
 0x387   : > { %v1237_v0 = vmul.f32 1.442695, %v1230_v63 }
 0x388   : > { %v863_v9 = vpop.permute.xlu1 %862 }
 0x389   : > { %2369 = vpow2.f32 %v1237_v0  ;;  %v909_v16 = vrot.slane %v863_v9, %v2694_v23 }
 0x38a   : > { %2371 = vpow2.f32 %v1235_v3 }
 0x38b   : > { %v2792_v62 = vpop.eup %2367 }
 0x38c   : > { %v1242_v11 = vsel %vm1030_vm3, %v2792_v62, 0.0 }
 0x38d   : > { %1243 = vadd.xlane.f32.xlu1 %v1242_v11 }
 0x393   : > { %v2798_v5 = vpop.eup %2369 }
 0x394   : > { %v1248_v6 = vsel %vm1030_vm3, %v2798_v5, 0.0  ;;  %v2802_v7 = vpop.eup %2371 }
 0x39b   : > { %866 = vrot.lane.b32.xlu0 %v2688_v14, %s2490_s26  ;;  %v1245_v14 = vsel %vm1030_vm3, %v2802_v7, 0.0 }
 0x39e   : > { %864 = vrot.lane.b32.xlu1 %v2690_v15, %s2490_s26  ;;  %v861_v15 = vpop.permute.xlu0 %860 }
 0x39f   : > { %v875_v22 = vrot.slane %v861_v15, %v2694_v23 }
 0x3ba   : > { %1249 = vadd.xlane.f32.xlu0 %v1248_v6 }
 0x3c2   : > { %1246 = vadd.xlane.f32.xlu1 %v1245_v14 }
 0x412   : > { %v1241_v8 = vpop.xlane.xlu0 %1240 }
 0x413   : > { %2373 = vrcp.f32 %v1241_v8 }
 0x416   : > { %v867_v10 = vpop.permute.xlu0 %866 }
 0x417   : > { %v917_v12 = vrot.slane %v867_v10, %v2694_v23 }
 0x419   : > { %v918_v17 = vcombine.low %v909_v16, %v917_v12  ;;  %v919_v19 = vcombine.high %v909_v16, %v917_v12 }
 0x41a   : > { %v1244_v18 = vpop.xlane.xlu1 %1243 }
 0x41b   : > { %v926_v20 = vrot.slane %v918_v17, %v2704_v31  ;;  %v933_v25 = vrot.slane %v919_v19, %v2704_v31  ;;  %2375 = vrcp.f32 %v1244_v18 }
 0x41d   : > { %v934_v28 = vcombine.high %v926_v20, %v2489_v40  ;;  %v935_v32 = vcombine.high %v933_v25, %v2489_v40  ;;  %v941_v33 = vshrl.u32 %v926_v20, 16  ;;  %v957_v44 = vshrl.u32 %v933_v25, 16  ;;  %v2374_v58 = vpop.eup %2373 }
 0x41e   : > { %v865_v21 = vpop.permute.xlu1 %864  ;;  %v1255_v6 = vmul.f32 %v2374_v58, %v2788_v60 }
 0x41f   : > { %v883_v24 = vrot.slane %v865_v21, %v2694_v23  ;;  %v949_v43 = vshrl.u32 %v934_v28, 16  ;;  %v965_v51 = vshrl.u32 %v935_v32, 16 }
 0x420   : > { %v1259_v21 = vpack.c.bf16 %v1255_v6, %v1255_v6 }
 0x421   : > { %v884_v26 = vcombine.low %v875_v22, %v883_v24  ;;  %v885_v27 = vcombine.high %v875_v22, %v883_v24 }
 0x423   : > { %v892_v29 = vrot.slane %v884_v26, %v2704_v31  ;;  %v899_v30 = vrot.slane %v885_v27, %v2704_v31 }
 0x425   : > { %v900_v38 = vcombine.high %v892_v29, %v2489_v40  ;;  %v901_v39 = vcombine.high %v899_v30, %v2489_v40  ;;  %v938_v41 = vpack.i.b16 %v926_v20, %v892_v29  ;;  %v940_v42 = vshrl.u32 %v892_v29, 16  ;;  %v2376_v61 = vpop.eup %2375 }
 0x426   : > { %v954_v45 = vpack.i.b16 %v933_v25, %v899_v30  ;;  %v956_v46 = vshrl.u32 %v899_v30, 16  ;;  %v1256_v10 = vmul.f32 %v2376_v61, %v2792_v62 }
 0x427   : > { %v942_v47 = vpack.i.b16 %v941_v33, %v940_v42  ;;  %v946_v48 = vpack.i.b16 %v934_v28, %v900_v38  ;;  %v948_v49 = vshrl.u32 %v900_v38, 16  ;;  %v962_v50 = vpack.i.b16 %v935_v32, %v901_v39  ;;  %v2353_v38 = vld [vmem:[%s2634_s27] sm:$0xff]  }
 0x428   : > { %v958_v52 = vpack.i.b16 %v957_v44, %v956_v46  ;;  %v964_v53 = vshrl.u32 %v901_v39, 16  ;;  %v968_v34 = vcombine.low %v938_v41, %v954_v45  ;;  %v1260_v24 = vpack.c.bf16 %v1256_v10, %v1256_v10 }
 0x429   : > { %v950_v36 = vpack.i.b16 %v949_v43, %v948_v49  ;;  %v976_v54 = vcombine.low %v946_v48, %v962_v50 }
 0x42a   : > { %v966_v35 = vpack.i.b16 %v965_v51, %v964_v53  ;;  %v993_v37 = vcombine.low %v942_v47, %v958_v52  ;;  %v975_v55 = vrot.slane %v968_v34, %v2694_v23 }
 0x42b   : > { %v983_v56 = vrot.slane %v976_v54, %v2694_v23 }
 0x42c   : > { %v1001_v57 = vcombine.low %v950_v36, %v966_v35  ;;  %v1000_v11 = vrot.slane %v993_v37, %v2694_v23 }
 0x42d   : > { %v984_v59 = vcombine.low %v975_v55, %v983_v56 }
 0x42e   : > { %v1008_v13 = vrot.slane %v1001_v57, %v2694_v23 }
 0x42f   : > { %v991_v63 = vrot.slane %v984_v59, %v2704_v31 }
 0x430   : > { %v1009_v0 = vcombine.low %v1000_v11, %v1008_v13 }
 0x431   : > { %v992_v1 = vcombine.high %v991_v63, %v2489_v40  ;;  %v1021_v15 = vshrl.u32 %v991_v63, 16 }
 0x432   : > { %v1016_v3 = vrot.slane %v1009_v0, %v2704_v31 }
 0x433   : > { %v1027_v12 = vshrl.u32 %v992_v1, 16 }
 0x434   : > { %v1020_v14 = vpack.i.b16 %v1016_v3, %v991_v63  ;;  %v1022_v8 = vshrl.u32 %v1016_v3, 16  ;;  %v1017_v9 = vcombine.high %v1016_v3, %v2489_v40 }
 0x436   : > { %v1268_v16 = vsel %vm1266_vm4, %v1020_v14, 0  ;;  %v1023_v17 = vpack.i.b16 %v1022_v8, %v1021_v15  ;;  %v1026_v18 = vpack.i.b16 %v1017_v9, %v992_v1  ;;  %v1028_v19 = vshrl.u32 %v1017_v9, 16 }
 0x437   : > { %2208 = vmatpush3.bf16.msra.mxu1 %v1268_v16 }
 0x438   : > { %v1314_v20 = vsel %vm1266_vm4, %v1023_v17, 0  ;;  %2219 = vmatprep.subr.bf16.mxu1 %v2481_v2  ;;  %v1029_v60 = vpack.i.b16 %v1028_v19, %v1027_v12  ;;  %v1360_v22 = vsel %vm1266_vm4, %v1026_v18, 0 }
 0x439   : > { %2214 = vmatpush3.bf16.msra.mxu0 %v1314_v20 }
 0x43a   : > { %2210 = vmatmul.mubr.msk.bf16.vlgmr.msra.gmra.mrb[4].mxu1 %vm1030_vm3, %v1259_v21  ;;  %2225 = vmatprep.subr.bf16.mxu0 %v2481_v2  ;;  %v1406_v62 = vsel %vm1266_vm4, %v1029_v60, 0 }
 0x43b   : > { %2220 = vmatpush3.bf16.msra.mxu1 %v1360_v22  ;;  %2221 = vmatprep.mubr.msk.bf16.mxu1 %vm2482_vm1, %v2481_v2 }
 0x43c   : > { %2216 = vmatmul.mubr.msk.bf16.vlgmr.msra.gmra.mrb[16].mxu0 %vm1030_vm3, %v1260_v24  ;;  %2231 = vmatprep.subr.bf16.mxu1 %v2481_v2 }
 0x43d   : > { %2226 = vmatpush3.bf16.msra.mxu0 %v1406_v62  ;;  %2227 = vmatprep.mubr.msk.bf16.mxu0 %vm2482_vm1, %v2481_v2 }
 0x43e   : > { %2239 = vmatprep.subr.bf16.mxu0 %v2481_v2 }
 0x447   : > { %v1250_v25 = vpop.xlane.xlu0 %1249 }
 0x448   : > { %2377 = vrcp.f32 %v1250_v25 }
 0x44f   : > { %v1247_v26 = vpop.xlane.xlu1 %1246 }
 0x450   : > { %2379 = vrcp.f32 %v1247_v26 }
 0x452   : > { %v2378_v27 = vpop.eup %2377 }
 0x453   : > { %v1258_v28 = vmul.f32 %v2378_v27, %v2798_v5 }
 0x455   : > { %v1262_v29 = vpack.c.bf16 %v1258_v28, %v1258_v28 }
 0x457   : > { %2228 = vmatmul.mubr.msk.bf16.vlgmr.msra.gmra.mrb[20].mxu0 %vm1030_vm3, %v1262_v29 }
 0x458   : > { %2243 = vmatprep.mubr.msk.bf16.mxu0 %vm2482_vm1, %v2481_v2 }
 0x45a   : > { %v2380_v30 = vpop.eup %2379 }
 0x45b   : > { %v1257_v32 = vmul.f32 %v2380_v30, %v2802_v7 }
 0x45d   : > { %v1261_v33 = vpack.c.bf16 %v1257_v32, %v1257_v32 }
 0x45f   : > { %2222 = vmatmul.mubr.msk.bf16.vlgmr.msra.gmra.mrb[8].mxu1 %vm1030_vm3, %v1261_v33  ;;  %v2354_v33 = vld [vmem:[%s2634_s27 + $0x8] sm:$0xff]   ;;  %s2491_s27 = smov 8  }
 0x460   : > { %2235 = vmatprep.mubr.msk.bf16.mxu1 %vm2482_vm1, %v2481_v2  ;;  %2232 = vmatpush3.bf16.msra.mxu1 %v2353_v38 }
 0x461   : > { %2233 = vmatprep.subr.bf16.mxu1 %v2481_v2 }
 0x464   : > { %2234 = vmatpush3.bf16.msra.mxu1 %v2354_v33 }
 0x465   : > { %2247 = vmatprep.subr.bf16.mxu1 %v2481_v2 }
 0x50d   : > { %v1304_v5 = vpop.f32.mrb[4].mxu1 }
 0x50e   : > { %v2211_v39 = vpop.f32.mrb[5].mxu1  ;;  %v1448_v54 = vpack.c.bf16 %v1304_v5, %v1304_v5 }
 0x50f   : > { %v1307_v41 = vpop.f32.mrb[6].mxu1  ;;  %v1350_v42 = vpop.f32.mrb[16].mxu0 }
 0x510   : > { %v2212_v43 = vpop.f32.mrb[7].mxu1  ;;  %v2217_v44 = vpop.f32.mrb[17].mxu0  ;;  %v1482_v47 = vpack.c.bf16 %v1350_v42, %v1350_v42  ;;  %v1455_v59 = vrot.slane %v1448_v54, %v2694_v23 }
 0x511   : > { %v1353_v45 = vpop.f32.mrb[18].mxu0 }
 0x512   : > { %v2218_v46 = vpop.f32.mrb[19].mxu0  ;;  %v1489_v51 = vrot.slane %v1482_v47, %v2694_v23 }
 0x52a   : > { %v1442_v7 = vpop.f32.mrb[20].mxu0 }
 0x52b   : > { %v1490_v48 = vpack.c.bf16 %v1442_v7, %v1442_v7  ;;  %v2229_v49 = vpop.f32.mrb[21].mxu0 }
 0x52c   : > { %v1445_v50 = vpop.f32.mrb[22].mxu0 }
 0x52d   : > { %v1497_v52 = vrot.slane %v1490_v48, %v2694_v23  ;;  %v2230_v53 = vpop.f32.mrb[23].mxu0 }
 0x52f   : > { %v1498_v34 = vcombine.low %v1489_v51, %v1497_v52  ;;  %v1499_v36 = vcombine.high %v1489_v51, %v1497_v52 }
 0x531   : > { %v1506_v57 = vrot.slane %v1498_v34, %v2704_v31  ;;  %v1513_v11 = vrot.slane %v1499_v36, %v2704_v31 }
 0x532   : > { %v1396_v35 = vpop.f32.mrb[8].mxu1 }
 0x533   : > { %v2223_v37 = vpop.f32.mrb[9].mxu1  ;;  %v1456_v55 = vpack.c.bf16 %v1396_v35, %v1396_v35  ;;  %v1514_v0 = vcombine.high %v1506_v57, %v2489_v40  ;;  %v1515_v6 = vcombine.high %v1513_v11, %v2489_v40  ;;  %v1521_v14 = vshrl.u32 %v1506_v57, 16  ;;  %v2111_v35 = vld [vmem:[%s2655_s18] ss:$0 sm:$0xff] }
 0x534   : > { %v1399_v56 = vpop.f32.mrb[10].mxu1  ;;  %v1537_v16 = vshrl.u32 %v1513_v11, 16 }
 0x535   : > { %v2224_v58 = vpop.f32.mrb[11].mxu1  ;;  %v1463_v61 = vrot.slane %v1456_v55, %v2694_v23  ;;  %v1529_v12 = vshrl.u32 %v1514_v0, 16  ;;  %v1545_v22 = vshrl.u32 %v1515_v6, 16 }
 0x537   : > { %v1464_v13 = vcombine.low %v1455_v59, %v1463_v61  ;;  %v1465_v63 = vcombine.high %v1455_v59, %v1463_v61 }
 0x539   : > { %v1472_v1 = vrot.slane %v1464_v13, %v2704_v31  ;;  %v1479_v3 = vrot.slane %v1465_v63, %v2704_v31 }
 0x53b   : > { %v1480_v15 = vcombine.high %v1472_v1, %v2489_v40  ;;  %v1481_v8 = vcombine.high %v1479_v3, %v2489_v40  ;;  %v1518_v9 = vpack.i.b16 %v1506_v57, %v1472_v1  ;;  %v1520_v10 = vshrl.u32 %v1472_v1, 16 }
 0x53c   : > { %v1534_v17 = vpack.i.b16 %v1513_v11, %v1479_v3  ;;  %v1536_v18 = vshrl.u32 %v1479_v3, 16  ;;  %v2355_v3 = vld [vmem:[%s2639_s8] sm:$0xff]  }
 0x53d   : > { %v1522_v19 = vpack.i.b16 %v1521_v14, %v1520_v10  ;;  %v1526_v20 = vpack.i.b16 %v1514_v0, %v1480_v15  ;;  %v1528_v21 = vshrl.u32 %v1480_v15, 16  ;;  %v1542_v60 = vpack.i.b16 %v1515_v6, %v1481_v8  ;;  %2240 = vmatpush3.bf16.msra.mxu0 %v2355_v3  ;;  %v2356_v6 = vld [vmem:[%s2639_s8 + $0x8] sm:$0xff]   ;;  %v2359_v15 = vld [vmem:[%s2649_s10 + $0x10] sm:$0xff]  }
 0x53e   : > { %v1538_v24 = vpack.i.b16 %v1537_v16, %v1536_v18  ;;  %v1544_v62 = vshrl.u32 %v1481_v8, 16  ;;  %v1548_v25 = vcombine.low %v1518_v9, %v1534_v17  ;;  %2241 = vmatprep.subr.bf16.mxu0 %v2481_v2  ;;  %v2358_v14 = vld [vmem:[%s2649_s10 + $0x8] sm:$0xff]   ;;  %v2360_v8 = vld [vmem:[%s2649_s10 + $0x18] sm:$0xff]   ;;  %v2361_v9 = vld [vmem:[%s2649_s10 + $0x20] sm:$0xff]  }
 0x53f   : > { %v1530_v26 = vpack.i.b16 %v1529_v12, %v1528_v21  ;;  %v1556_v27 = vcombine.low %v1526_v20, %v1542_v60  ;;  %v2362_v10 = vld [vmem:[%s2649_s10 + $0x28] sm:$0xff]   ;;  %v2116_v21 = vld [vmem:[%s2655_s18 + $0x2] ss:$0 sm:$0xff] }
 0x540   : > { %v1546_v28 = vpack.i.b16 %v1545_v22, %v1544_v62  ;;  %v1573_v29 = vcombine.low %v1522_v19, %v1538_v24  ;;  %v1555_v30 = vrot.slane %v1548_v25, %v2694_v23  ;;  %v2115_v19 = vld [vmem:[%s2655_s18 + $0x1] ss:$0 sm:$0xff]  ;;  %v2363_v62 = vld [vmem:[%s2649_s10 + $0x30] sm:$0xff]   ;;  %v2364_v25 = vld [vmem:[%s2649_s10 + $0x38] sm:$0xff]  }
 0x541   : > { %v1563_v32 = vrot.slane %v1556_v27, %v2694_v23  ;;  %2242 = vmatpush3.bf16.msra.mxu0 %v2356_v6 }
 0x542   : > { %v1581_v38 = vcombine.low %v1530_v26, %v1546_v28  ;;  %v1580_v39 = vrot.slane %v1573_v29, %v2694_v23  ;;  %v2117_v26 = vld [vmem:[%s428_s14] ss:$0 sm:$0xff] }
 0x543   : > { %v1564_v5 = vcombine.low %v1555_v30, %v1563_v32 }
 0x544   : > { %v1588_v41 = vrot.slane %v1581_v38, %v2694_v23 }
 0x545   : > { %v1571_v42 = vrot.slane %v1564_v5, %v2704_v31  ;;  %v2121_v5 = vld [vmem:[%s2655_s18 + $0x3] ss:$0 sm:$0xff] }
 0x546   : > { %v1589_v43 = vcombine.low %v1580_v39, %v1588_v41 }
 0x547   : > { %v1572_v45 = vcombine.high %v1571_v42, %v2489_v40  ;;  %v1601_v46 = vshrl.u32 %v1571_v42, 16 }
 0x548   : > { %v1596_v44 = vrot.slane %v1589_v43, %v2704_v31 }
 0x549   : > { %v1607_v51 = vshrl.u32 %v1572_v45, 16 }
 0x54a   : > { %v1602_v47 = vshrl.u32 %v1596_v44, 16  ;;  %v1597_v7 = vcombine.high %v1596_v44, %v2489_v40  ;;  %v1600_v48 = vpack.i.b16 %v1596_v44, %v1571_v42 }
 0x54c   : > { %v1603_v49 = vpack.i.b16 %v1602_v47, %v1601_v46  ;;  %v1606_v50 = vpack.i.b16 %v1597_v7, %v1572_v45  ;;  %v1608_v52 = vshrl.u32 %v1597_v7, 16 }
 0x54e   : > { %1610 = vrot.lane.b32.xlu0 %v1603_v49, %s2491_s27  ;;  %1612 = vrot.lane.b32.xlu1 %v1606_v50, %s2492_s13  ;;  %v1609_v23 = vpack.i.b16 %v1608_v52, %v1607_v51 }
 0x552   : > { %1614 = vrot.lane.b32.xlu1 %v1609_v23, %s2493_s15 }
 0x5c0   : > { %v1611_v31 = vpop.permute.xlu0 %1610  ;;  %v1613_v53 = vpop.permute.xlu1 %1612 }
 0x5c1   : > { %v1618_v34 = vsel %vm1030_vm3, %v1600_v48, %v1611_v31  ;;  %v2130_v31 = vld [vmem:[%s2655_s18 + $0x4] ss:$0 sm:$0xff] }
 0x5c2   : > { %v1621_v40 = vsel %vm1619_vm5, %v1618_v34, %v1613_v53  ;;  %v2131_v34 = vld [vmem:[%s2655_s18 + $0x5] ss:$0 sm:$0xff] }
 0x5c4   : > { %v1615_v36 = vpop.permute.xlu1 %1614 }
 0x5c5   : > { %v1624_v54 = vsel %vm1622_vm6, %v1621_v40, %v1615_v36 }
 0x5c6   : > { %2236 = vmatmul.mubr.msk.bf16.vlgmr.msra.gmra.mrb[12].mxu1 %vm477_vm2, %v1624_v54 }
 0x5c7   : > { %2263 = vmatprep.mubr.msk.bf16.mxu1 %vm2482_vm1, %v2481_v2 }
 0x699   : > { %v1681_v37 = vpop.f32.mrb[12].mxu1 }
 0x69a   : > { %v1682_v55 = vadd.f32 %v2111_v35, %v1681_v37  ;;  %v2237_v56 = vpop.f32.mrb[13].mxu1 }
 0x69b   : > { %v1684_v57 = vpop.f32.mrb[14].mxu1 }
 0x69c   : > { %v2238_v58 = vpop.f32.mrb[15].mxu1  ;;  %v1687_v59 = vadd.f32 %v1682_v55, %v2663_v4  ;;  %v2357_v4 = vld [vmem:[%s2649_s10] sm:$0xff]  }
 0x69d   : > { %2248 = vmatpush3.bf16.msra.mxu1 %v2357_v4 }
 0x69e   : > { %v1688_v61 = vsel %vm477_vm2, %v1687_v59, 0.0  ;;  %2249 = vmatprep.subr.bf16.mxu1 %v2481_v2 }
 0x69f   : > { %1689 = vadd.xlane.f32.xlu0 %v1688_v61 }
 0x6a1   : > { %2250 = vmatpush3.bf16.msra.mxu1 %v2358_v14 }
 0x6a2   : > { %2251 = vmatprep.subr.bf16.mxu1 %v2481_v2 }
 0x6a5   : > { %2252 = vmatpush3.bf16.msra.mxu1 %v2359_v15 }
 0x6a6   : > { %2253 = vmatprep.subr.bf16.mxu1 %v2481_v2 }
 0x6a9   : > { %2254 = vmatpush3.bf16.msra.mxu1 %v2360_v8 }
 0x6aa   : > { %2255 = vmatprep.subr.bf16.mxu1 %v2481_v2 }
 0x6ad   : > { %2256 = vmatpush3.bf16.msra.mxu1 %v2361_v9 }
 0x6ae   : > { %2257 = vmatprep.subr.bf16.mxu1 %v2481_v2 }
 0x6b1   : > { %2258 = vmatpush3.bf16.msra.mxu1 %v2362_v10 }
 0x6b2   : > { %2259 = vmatprep.subr.bf16.mxu1 %v2481_v2 }
 0x6b5   : > { %2260 = vmatpush3.bf16.msra.mxu1 %v2363_v62 }
 0x6b6   : > { %2261 = vmatprep.subr.bf16.mxu1 %v2481_v2 }
 0x6b9   : > { %2262 = vmatpush3.bf16.msra.mxu1 %v2364_v25 }
 0x72c   : > { %v1690_v11 = vpop.xlane.xlu0 %1689 }
 0x72d   : > { %v1692_v13 = vmul.f32 0.03125, %v1690_v11 }
 0x72f   : > { %v1693_v63 = vsub.f32 %v1687_v59, %v1692_v13 }
 0x731   : > { %v1694_v0 = vmul.f32 %v1693_v63, %v1693_v63 }
 0x733   : > { %v1695_v1 = vsel %vm477_vm2, %v1694_v0, 0.0 }
 0x734   : > { %1696 = vadd.xlane.f32.xlu1 %v1695_v1 }
 0x7c1   : > { %v1697_v12 = vpop.xlane.xlu1 %1696 }
 0x7c2   : > { %v1698_v16 = vmul.f32 0.03125, %v1697_v12 }
 0x7c4   : > { %v1699_v17 = vadd.f32 1e-05, %v1698_v16 }
 0x7c6   : > { %2381 = vrsqrt.f32 %v1699_v17 }
 0x7d0   : > { %v2382_v18 = vpop.eup %2381 }
 0x7d1   : > { %v1701_v20 = vmul.f32 %v2382_v18, %v1693_v63 }
 0x7d3   : > { %v1706_v60 = vmul.f32 %v2115_v19, %v1701_v20 }
 0x7d5   : > { %v1711_v22 = vadd.f32 %v2116_v21, %v1706_v60 }
 0x7d7   : > { %v1712_v24 = vpack.c.bf16 %v1711_v22, %v1711_v22 }
 0x7d9   : > { %2244 = vmatmul.mubr.msk.bf16.vlgmr.msra.gmra.mrb[24].mxu0 %vm477_vm2, %v1712_v24 }
 0x8ac   : > { %v1773_v27 = vpop.f32.mrb[24].mxu0 }
 0x8ad   : > { %v1774_v28 = vadd.f32 %v2117_v26, %v1773_v27  ;;  %v2245_v29 = vpop.f32.mrb[25].mxu0 }
 0x8ae   : > { %v1776_v30 = vpop.f32.mrb[26].mxu0 }
 0x8af   : > { %v1779_v32 = vmax.f32 %v1774_v28, 0.0  ;;  %v2246_v33 = vpop.f32.mrb[27].mxu0 }
 0x8b1   : > { %v1780_v38 = vpack.c.bf16 %v1779_v32, %v1779_v32 }
 0x8b3   : > { %2264 = vmatmul.mubr.bf16.vlgmr.msra.gmra.mrb[16].mxu1 %v1780_v38 }
 0x986   : > { %v1883_v39 = vpop.f32.mrb[16].mxu1 }
 0x987   : > { %v1884_v41 = vadd.f32 %v2121_v5, %v1883_v39  ;;  %v2265_v42 = vpop.f32.mrb[17].mxu1 }
 0x988   : > { %v1886_v2 = vpop.f32.mrb[18].mxu1 }
 0x989   : > { %v2266_v43 = vpop.f32.mrb[19].mxu1  ;;  %v1889_v44 = vadd.f32 %v1884_v41, %v1711_v22 }
 0x98b   : > { %v1890_v45 = vsel %vm477_vm2, %v1889_v44, 0.0 }
 0x98c   : > { %1891 = vadd.xlane.f32.xlu0 %v1890_v45 }
 0xa19   : > { %v1892_v46 = vpop.xlane.xlu0 %1891 }
 0xa1a   : > { %v1893_v47 = vmul.f32 0.03125, %v1892_v46 }
 0xa1c   : > { %v1894_v7 = vsub.f32 %v1889_v44, %v1893_v47 }
 0xa1e   : > { %v1895_v48 = vmul.f32 %v1894_v7, %v1894_v7 }
 0xa20   : > { %v1896_v49 = vsel %vm477_vm2, %v1895_v48, 0.0 }
 0xa21   : > { %1897 = vadd.xlane.f32.xlu0 %v1896_v49 }
 0xaae   : > { %v1898_v50 = vpop.xlane.xlu0 %1897 }
 0xaaf   : > { %v1899_v51 = vmul.f32 0.03125, %v1898_v50 }
 0xab1   : > { %v1900_v52 = vadd.f32 1e-05, %v1899_v51 }
 0xab3   : > { %2383 = vrsqrt.f32 %v1900_v52 }
 0xabd   : > { %v2384_v23 = vpop.eup %2383 }
 0xabe   : > { %v1902_v53 = vmul.f32 %v2384_v23, %v1894_v7  ;;  %1917 = sbr.rel (%p2132_p1) target bundleno = 2765 (0xacd), region = 60 }
 0xac0   : > { %v1907_v40 = vmul.f32 %v2130_v31, %v1902_v53 }
 0xac2   : > { %v1912_v36 = vadd.f32 %v2131_v34, %v1907_v40 }
 0xac4   : > { %1913 = vst.msk [vmem:[#allocation2] sm:$0xff] %vm477_vm2, %v1912_v36 }
 0xacb   : > { %v1918_v54 = vld [vmem:[#allocation2] sm:$0xff] }
 0xacc   : > { %1919 = vst.msk [vmem:[%s403_s1] sm:$0xff] %vm477_vm2, %v1918_v54 }
 0xacd PF: > { %s2134_s25 = sshll.u32 %s2467_s9, 7  ;;  %s3009_s11 = sld [smem:[#allocation17_spill]] }
 0xace   : > { %s1934_s0 = sshll.u32 %s403_s1, 4  ;;  %s3011_s30 = sand.u32 1, %s2455_s28   ;;  %s1935_s0 = int_to_ptr.vmem [resolvable:$true] %s1934_s0 }
 0xacf   : > { %s1921_s12 = scalar_lea.sflag [#allocation4], %s3011_s30  ;;  %s2385_s21 = scalar_lea.vmem %s1935_s0, 128 }
 0xad0   : > { %p2386_p2 = scmp.ne.s32.totalorder %s1935_s0, %s2385_s21  ;;  %s2494_s22 = smov [#allocation3]  }
 0xad1   : > { %s2389_s19 = sshll.u32 %s2494_s22, 4  ;;  %s2390_s19 = int_to_ptr.vmem [resolvable:$false] %s2389_s19 }
 0xad2   : > { %p2387_p4 = pnand %p2386_p2, %p2589_p3  ;;  %s2391_s20 = scalar_lea.vmem %s2390_s19, 256 }
 0xad3   : > { %s3010_s18 = smov %s3009_s11  ;;  %s2922_s29 = scalar_lea.hbm %s3009_s11, %s2134_s25 }
 0xad4   : > { %p2388_p5 = pneg %p2387_p4  ;;  %p2392_p6 = scmp.lt.s32.totalorder %s1935_s0, %s2390_s19 }
 0xad5   : > { %p2393_p7 = scmp.lt.s32.totalorder %s2391_s20, %s2385_s21 }
 0xad7   : > { %p2394_p8 = por %p2393_p7, %p2392_p6 }
 0xad9   : > { %p2395_p10 = pnand %p2394_p8, %p2388_p5 }
 0xadb   : > { %2398 = shalt.err (!%p2395_p10)
}
 0xadc   : > { %s2399_s1 = scalar_lea.hbm %s2922_s29, 128  ;;  %s2403_s24 = scalar_lea.hbm %s3010_s18, 256 }
 0xadd   : > { %p2400_p11 = scmp.ne.s32.totalorder %s2922_s29, %s2399_s1  ;;  %p2404_p0 = scmp.lt.u32.totalorder %s2922_s29, %s3010_s18 }
 0xade   : > { %p2405_p1 = scmp.lt.u32.totalorder %s2403_s24, %s2399_s1  ;;  %p2407_p4 = scmp.lt.u32.totalorder %s2399_s1, %s2922_s29 }
 0xadf   : > { %p2401_p12 = pnand %p2400_p11, %p2589_p3 }
 0xae0   : > { %p2406_p2 = por %p2405_p1, %p2404_p0 }
 0xae1   : > { %p2402_p13 = pneg %p2401_p12 }
 0xae2   : > { %p2408_p5 = por %p2407_p4, %p2406_p2 }
 0xae4   : > { %p2409_p6 = pnand %p2408_p5, %p2402_p13 }
 0xae6   : > { %2412 = shalt.err (!%p2409_p6)
}
 0xae7   : > { %2267 = dma.vmem_to_hbm [thread:$0]  (%p2589_p3), %s1935_s0, 128, %s2922_s29, %s1921_s12  }
 0xae8 PF: > { %s3012_s13 = sld [smem:[#allocation10_spill]]  ;;  %s3013_s15 = sld [smem:[#allocation6_spill]] }
 0xaee   : > { %p2273_p7 = scmp.ge.s32.totalorder %s3012_s13, 2  ;;  %s1946_s16 = sand.u32 1, %s3013_s15  }
 0xaef   : > { %s1947_s25 = scalar_lea.sflag [#allocation4], %s1946_s16 }
 0xaf0   : > { %p2270_p8 = pnand %p2273_p7, %p2599_p9 }
 0xaf2   : > { %2446 = dma.done.wait (!%p2270_p8), %s1947_s25, 128  }
 0xaf3   : > { %2448 = vsyncadd (!%p2270_p8), %s1947_s25, 4294967168  ;;  %s21_s12 = sadd.s32 1, %s3012_s13   ;;  %s3015_s14 = sld [smem:[#allocation7_spill]] }
 0xaf4   : > { %p18_p10 = scmp.ge.s32.totalorder %s21_s12, 6   ;;  %s3016_s29 = sld [smem:[#allocation14_spill]] }
 0xaf5   : > { %s3017_s30 = sld [smem:[#allocation8_spill]]  ;;  %s3018_s9 = sld [smem:[#allocation9_spill]] }
 0xaf6   : > { %s3019_s10 = sld [smem:[#allocation11_spill]]  ;;  %s3020_s11 = sld [smem:[#allocation12_spill]] }
 0xaf7   : > { %s3021_s27 = smov %s2455_s28  ;;  %20 = sbr.rel (!%p18_p10) target bundleno = 9 (0x9), region = 116 }
 0xaf9   : > { %s3022_s28 = smov %s3015_s14 }
 0xafe   :  { %1952 = vsyncpa [#allocation4], 1 }
 0xaff   :  { %1954 = vsyncpa [#allocation4 + $0x1], 1 }

</bundles_post_ra>
